<compile_context>
chip_gen: v7x
topology: tpu7x:2x2x1
jax: 0.10.0
libtpu: 0.0.40
codegen_flags: <defaults>
</compile_context>

<pallas_src>
import jax
import jax.numpy as jnp
from jax.experimental import pallas as pl
from jax.experimental.pallas import tpu as pltpu


COUT_PAD = 128  # lane-dense output width


def conv_matmul_kernel(p_ref, w_ref, b_ref, o_ref):
    # Pure matmul (bf16 operands, f32 accumulate) + resident bias add.
    acc = jnp.dot(p_ref[...], w_ref[...], preferred_element_type=jnp.float32)
    o_ref[...] = acc + b_ref[...]


def stage1_forward(x_nchw, weight, bias):
    """x_nchw: (N, Cin, H, W)  weight: (Cout, Cin, KH, KW)  bias: (Cout,)"""
    N, Cin, H, W = x_nchw.shape
    Cout, _, KH, KW = weight.shape
    OH, OW = H - KH + 1, W - KW + 1

    # ---- glue: NCHW -> NHWC, im2col patch extraction (static slices) ----
    x = jnp.transpose(x_nchw, (0, 2, 3, 1)).astype(jnp.float32)  # (N, H, W, Cin)
    cols = []
    for kh in range(KH):
        for kw in range(KW):
            cols.append(x[:, kh:kh + OH, kw:kw + OW, :])         # (N, OH, OW, Cin)
    patches = jnp.stack(cols, axis=3)                            # (N, OH, OW, KH*KW, Cin)
    patches = patches.reshape(N * OH * OW, KH * KW * Cin)        # (M, K)
    M, K = patches.shape

    # weight (Cout, Cin, KH, KW) -> (KH, KW, Cin, Cout) -> (K, Cout), matching
    # the (kh, kw, cin) ordering of the patch columns.
    w_f32 = weight.astype(jnp.float32)
    w_mat = jnp.transpose(w_f32, (2, 3, 1, 0)).reshape(K, Cout)

    # Fold the "+1" into the bias (exact, done in f32):
    #   conv(x + 1) = conv(x) + sum over (Cin,KH,KW) of W.
    b_eff = bias.astype(jnp.float32) + jnp.sum(w_f32, axis=(1, 2, 3))  # (Cout,)

    # Lane-dense padding of the output channel dimension to 128.
    w_pad = jnp.zeros((K, COUT_PAD), dtype=jnp.float32).at[:, :Cout].set(w_mat)
    b_pad = jnp.zeros((1, COUT_PAD), dtype=jnp.float32).at[:, :Cout].set(b_eff[None, :])

    # bf16 MXU operands; bias stays f32 (added post-accumulation).
    patches_bf16 = patches.astype(jnp.bfloat16)
    w_bf16 = w_pad.astype(jnp.bfloat16)

    # ---- M tiling: multiple of 8, double-buffered, parallel across TCs ----
    TM = 512 if M >= 1024 else 128
    grid_m = pl.cdiv(M, TM)
    M_pad = grid_m * TM
    if M_pad != M:
        patches_bf16 = jnp.zeros((M_pad, K), dtype=jnp.bfloat16).at[:M, :].set(patches_bf16)

    out = pl.pallas_call(
        conv_matmul_kernel,
        out_shape=jax.ShapeDtypeStruct((M_pad, COUT_PAD), jnp.float32),
        grid=(grid_m,),
        in_specs=[
            pl.BlockSpec((TM, K), lambda i: (i, 0)),        # patch tile, pipelined
            pl.BlockSpec((K, COUT_PAD), lambda i: (0, 0)),  # weights, resident
            pl.BlockSpec((1, COUT_PAD), lambda i: (0, 0)),  # bias, resident
        ],
        out_specs=pl.BlockSpec((TM, COUT_PAD), lambda i: (i, 0)),
        compiler_params=pltpu.CompilerParams(
            dimension_semantics=("parallel",)),
    )(patches_bf16, w_bf16, b_pad)

    # ---- glue: (M_pad, 128) -> crop -> NHWC -> NCHW ----
    out = out[:M, :Cout].reshape(N, OH, OW, Cout)
    return jnp.transpose(out, (0, 3, 1, 2))


if __name__ == "__main__":
    key = jax.random.PRNGKey(0)
    k_x, k_w, k_b = jax.random.split(key, 3)

    N, Cin, H, W = 2, 3, 16, 16
    Cout, KH, KW = 32, 7, 7

    x = jax.random.normal(k_x, (N, Cin, H, W), dtype=jnp.float32)

    # Deterministic PyTorch-style init: U(-1/sqrt(fan_in), 1/sqrt(fan_in))
    fan_in = Cin * KH * KW
    bound = 1.0 / (fan_in ** 0.5)
    weight = jax.random.uniform(k_w, (Cout, Cin, KH, KW),
                                minval=-bound, maxval=bound, dtype=jnp.float32)
    bias = jax.random.uniform(k_b, (Cout,),
                              minval=-bound, maxval=bound, dtype=jnp.float32)

    out = stage1_forward(x, weight, bias)
    out = jax.block_until_ready(out)
    assert out.shape == (N, Cout, H - KH + 1, W - KW + 1), out.shape

    # Sanity check against XLA's f32 convolution of (x + 1); tolerance loosened
    # for the bf16 matmul operands (f32 accumulation).
    ref = jax.lax.conv_general_dilated(
        x + 1.0, weight, window_strides=(1, 1), padding="VALID",
        dimension_numbers=("NCHW", "OIHW", "NCHW"),
    ) + bias[None, :, None, None]
    assert jnp.allclose(out, ref, atol=5e-2, rtol=5e-2), \
        float(jnp.max(jnp.abs(out - ref)))

    print("KERNEL_OK")
</pallas_src>

<mosaic_0001>
module attributes {stable_mosaic.version = 11 : i64} {
  func.func @conv_matmul_kernel(%arg0: i32, %arg1: memref<128x147xbf16, #tpu.memory_space<vmem>>, %arg2: memref<147x128xbf16, #tpu.memory_space<vmem>>, %arg3: memref<1x128xf32, #tpu.memory_space<vmem>>, %arg4: memref<128x128xf32, #tpu.memory_space<vmem>>) attributes {dimension_semantics = [#tpu.dimension_semantics<parallel>], iteration_bounds = array<i64: 2>, scalar_prefetch = 0 : i64, scratch_operands = 0 : i64, tpu.core_type = #tpu.core_type<tc>, window_params = [{transform_indices = @transform_0, window_bounds = array<i64: 128, 147>}, {pipeline_mode = #tpu.pipeline_mode<synchronous>, transform_indices = @transform_1, window_bounds = array<i64: 147, 128>}, {pipeline_mode = #tpu.pipeline_mode<synchronous>, transform_indices = @transform_2, window_bounds = array<i64: 1, 128>}, {transform_indices = @transform_3, window_bounds = array<i64: 128, 128>}]} {
    %c0 = arith.constant 0 : index
    %c0_0 = arith.constant 0 : index
    %0 = vector.load %arg1[%c0, %c0_0] : memref<128x147xbf16, #tpu.memory_space<vmem>>, vector<128x147xbf16>
    %c0_1 = arith.constant 0 : index
    %c0_2 = arith.constant 0 : index
    %1 = vector.load %arg2[%c0_1, %c0_2] : memref<147x128xbf16, #tpu.memory_space<vmem>>, vector<147x128xbf16>
    %cst = arith.constant dense<0.000000e+00> : vector<128x128xf32>
    %2 = tpu.matmul %0, %1, %cst {dimension_numbers = #tpu.dot_dimension_numbers<[1], [0], [0], [1], [0, 0, 1, 1], [], []>} : vector<128x147xbf16>, vector<147x128xbf16>, vector<128x128xf32> -> vector<128x128xf32>
    %c0_3 = arith.constant 0 : index
    %c0_4 = arith.constant 0 : index
    %3 = vector.load %arg3[%c0_3, %c0_4] : memref<1x128xf32, #tpu.memory_space<vmem>>, vector<1x128xf32>
    %4 = vector.broadcast %3 : vector<1x128xf32> to vector<128x128xf32>
    %5 = arith.addf %2, %4 : vector<128x128xf32>
    %c0_5 = arith.constant 0 : index
    %c0_6 = arith.constant 0 : index
    %6 = vector.load %arg4[%c0_5, %c0_6] : memref<128x128xf32, #tpu.memory_space<vmem>>, vector<128x128xf32>
    tpu.vector_store %arg4[%c0_5, %c0_6], %5 {strides = array<i32>} : memref<128x128xf32, #tpu.memory_space<vmem>>, vector<128x128xf32>,
    return
  }
  func.func @transform_0(%arg0: i32) -> (i32, i32) {
    %c0_i32 = arith.constant 0 : i32
    %c0_i32_0 = arith.constant 0 : i32
    return %arg0, %c0_i32 : i32, i32
  }
  func.func @transform_1(%arg0: i32) -> (i32, i32) {
    %c0_i32 = arith.constant 0 : i32
    %c0_i32_0 = arith.constant 0 : i32
    %c0_i32_1 = arith.constant 0 : i32
    return %c0_i32, %c0_i32_0 : i32, i32
  }
  func.func @transform_2(%arg0: i32) -> (i32, i32) {
    %c0_i32 = arith.constant 0 : i32
    %c0_i32_0 = arith.constant 0 : i32
    %c0_i32_1 = arith.constant 0 : i32
    return %c0_i32, %c0_i32_0 : i32, i32
  }
  func.func @transform_3(%arg0: i32) -> (i32, i32) {
    %c0_i32 = arith.constant 0 : i32
    %c0_i32_0 = arith.constant 0 : i32
    return %arg0, %c0_i32 : i32, i32
  }
}

</mosaic_0001>

<bundles_post_ra>
// kernel: tpu_custom_call.1
= control target key start
LH: loop header
LB: loop body
LE: loop exit
PB: predicated region body
PF: predicated region fallthrough
CT: control target
= control target key end

     0   :  { %8 = vsyncpa [#allocation3], 0  ;;  %s1006_s0 = inlined_call_operand.vmem [shape: bf16[256,147], index: 0, kind: input, shape index: {}]   ;;  %s1007_s1 = inlined_call_operand.vmem [shape: bf16[147,128], index: 1, kind: input, shape index: {}]   ;;  %s1008_s2 = inlined_call_operand.vmem [shape: f32[1,128], index: 2, kind: input, shape index: {}]   ;;  %s1009_s3 = inlined_call_operand.hbm [shape: f32[256,128], index: 3, kind: output, shape index: {}]  }
   0x1   :  { %10 = vsyncpa [#allocation3 + $0x1], 0  ;;  %s804_s12 = smov 0   ;;  %s806_s13 = smov 0  }
   0x2   :  { %s808_s14 = smov 0   ;;  %s810_s15 = smov 0  }
   0x3 LB: > { %s825_s16 = sadd.s32 4294967295, %s777_s15   ;;  %s568_s17 = sadd.s32 4294967294, %s777_s15   ;;  %s777_s15 = sphi %s810_s15, %s1015_s15   ;;  %s773_s14 = sphi %s808_s14, %s1014_s14   ;;  %s769_s13 = sphi %s806_s13, %s1013_s13   ;;  %s765_s12 = sphi %s804_s12, %s1012_s12  }
   0x4   : > { %s829_s18 = sadd.s32 1, %s777_s15   ;;  %s91_s19 = sadd.s32 1, %s773_s14 }
   0x5   : > { %s88_s20 = ssub.s32 %s777_s15, %s829_s18  ;;  %p101_p0 = scmp.ne.s32.totalorder %s773_s14, %s769_s13 }
   0x6   : > { %p89_p1 = scmp.eq.s32.totalorder %s88_s20, 0  ;;  %p102_p2 = scmp.eq.s32.totalorder %s825_s16, 1 }
   0x7   : > { %p107_p3 = scmp.ne.s32.totalorder %s769_s13, %s765_s12  ;;  %p108_p4 = scmp.eq.s32.totalorder %s568_s17, 1 }
   0x8   : > { %s840_s21 = scalar_select %p89_p1, %s773_s14, %s91_s19  }
   0x9   : > { %p842_p5 = por %p102_p2, %p101_p0  ;;  %p846_p6 = por %p108_p4, %p107_p3 }
   0xa   : > { %p571_p7 = scmp.ge.s32.totalorder %s777_s15, 1  ;;  %p142_p8 = scmp.lt.s32.totalorder %s777_s15, 3 }
   0xc   : > { %p143_p9 = pnand %p571_p7, %p142_p8 }
   0xd   : > { %v681_v0 = vld [vmem:[%s1007_s1] sm:$0xff] (!%p143_p9)   ;;  %v779_v1 = vmov (!%p143_p9), 0   ;;  %v682_v2 = vld [vmem:[%s1007_s1 + $0x8] sm:$0xff] (!%p143_p9)   ;;  %v683_v3 = vld [vmem:[%s1007_s1 + $0x10] sm:$0xff] (!%p143_p9)   ;;  %s573_s30 = sshll.u32 (!%p143_p9), %s825_s16, 4  ;;  %vm347_vm0 = vcmask (!%p143_p9), 154624  }
   0xe   : > { %146 = sbr.rel (%p143_p9) target bundleno = 309 (0x135), region = 32  ;;  %379 = vmatprep.subr.bf16.mxu0 (!%p143_p9), %v779_v1  ;;  %618 = vmatprep.subr.bf16.mxu1 (!%p143_p9), %v779_v1  ;;  %p168_p10 = scmp.lt.s32.totalorder (!%p143_p9), %s573_s30, 31  ;;  %v684_v4 = vld [vmem:[%s1007_s1 + $0x18] sm:$0xff] (!%p143_p9)   ;;  %v685_v5 = vld [vmem:[%s1007_s1 + $0x20] sm:$0xff] (!%p143_p9)   ;;  %v686_v8 = vld [vmem:[%s1007_s1 + $0x28] sm:$0xff] (!%p143_p9)   ;;  %vm372_vm1 = vcmask (!%p143_p9), 1040384  }
   0xf   : > { %380 = vmatpush1.bf16.msra.mxu0 (!%p143_p9), %v681_v0  ;;  %628 = vmatpush1.bf16.msra.mxu1 (!%p143_p9), %v681_v0  ;;  %v687_v9 = vld [vmem:[%s1007_s1 + $0x30] sm:$0xff] (!%p143_p9)   ;;  %v688_v10 = vld [vmem:[%s1007_s1 + $0x38] sm:$0xff] (!%p143_p9)   ;;  %vm373_vm2 = vcmask (!%p143_p9), 1041408   ;;  %v780_v11 = vmov (!%p143_p9), 65535   ;;  %v689_v13 = vld [vmem:[%s1007_s1 + $0x40] sm:$0xff] (!%p143_p9)   ;;  %s164_s4 = sand.u32 (!%p143_p9), 1, %s769_s13  }
  0x10   : > { %381 = vmatprep.subr.bf16.mxu0 (!%p143_p9), %v779_v1  ;;  %619 = vmatprep.subr.bf16.mxu1 (!%p143_p9), %v779_v1  ;;  %v374_v12 = vsel (!%p143_p9), %vm372_vm1, 4294967295, %v780_v11  ;;  %v690_v14 = vld [vmem:[%s1007_s1 + $0x48] ss:$0 sps:$4 sm:$0x33] (!%p143_p9)   ;;  %s572_s5 = sshll.u32 (!%p143_p9), %s164_s4, 7  ;;  %s781_s24 = smov (!%p143_p9), [#allocation2]  }
  0x11   : > { %v375_v15 = vsel (!%p143_p9), %vm373_vm2, %v374_v12, 0  ;;  %v918_v31 = vld [vmem:[%s1008_s2] ss:$0 sm:$0xff] (!%p143_p9)  ;;  %s922_s8 = scalar_lea.vmem (!%p143_p9), [#allocation2], %s572_s5  ;;  %s719_s25 = sshll.u32 (!%p143_p9), %s781_s24, 4  ;;  %s720_s25 = int_to_ptr.vmem [resolvable:$false] %s719_s25 }
  0x12   : > { %v377_v16 = vand.u32 (!%p143_p9), %v690_v14, %v375_v15  ;;  %s506_s10 = sshll.u32 (!%p143_p9), %s922_s8, 4  ;;  %s721_s26 = scalar_lea.vmem (!%p143_p9), %s720_s25, 4096  ;;  %s955_s10 = int_to_ptr.vmem [resolvable:$true] %s506_s10 }
  0x13   : > { %382 = vmatpush1.bf16.msra.mxu0 (!%p143_p9), %v682_v2  ;;  %629 = vmatpush1.bf16.msra.mxu1 (!%p143_p9), %v682_v2  ;;  %s715_s20 = scalar_lea.vmem (!%p143_p9), %s955_s10, 2048  ;;  %p722_p0 = scmp.lt.s32.totalorder (!%p143_p9), %s955_s10, %s720_s25 }
  0x14   : > { %383 = vmatprep.subr.bf16.mxu0 (!%p143_p9), %v779_v1  ;;  %620 = vmatprep.subr.bf16.mxu1 (!%p143_p9), %v779_v1  ;;  %p716_p11 = scmp.ne.s32.totalorder (!%p143_p9), %s955_s10, %s715_s20  ;;  %p723_p1 = scmp.lt.s32.totalorder (!%p143_p9), %s721_s26, %s715_s20 }
  0x15   : > { %s1017_s30 = smov (!%p168_p10, %s573_s30), 31 }
  0x16   : > { %s616_s6 = sshll.u32 %s1017_s30, 3  ;;  %p717_p12 = pnand %p716_p11, %p842_p5 }
  0x17   : > { %384 = vmatpush1.bf16.msra.mxu0 %v683_v3  ;;  %630 = vmatpush1.bf16.msra.mxu1 %v683_v3  ;;  %s868_s9 = scalar_lea.vmem %s1006_s0, %s616_s6  ;;  %p724_p2 = por %p723_p1, %p722_p0 }
  0x18   : > { %385 = vmatprep.subr.bf16.mxu0 %v779_v1  ;;  %621 = vmatprep.subr.bf16.mxu1 %v779_v1  ;;  %v693_v6 = vld [vmem:[%s868_s9 + $0x4] ss:$8 sps:$4 sm:$0xff]   ;;  %v691_v17 = vld [vmem:[%s868_s9] ss:$8 sps:$4 sm:$0xff]   ;;  %v697_v19 = vld [vmem:[%s868_s9 + $0x14] ss:$8 sps:$4 sm:$0xff]   ;;  %p718_p13 = pneg %p717_p12 }
  0x19   : > { %v696_v7 = vld [vmem:[%s868_s9 + $0x44] ss:$8 sps:$4 sm:$0xff]   ;;  %603 = vmatprep.mubr.msk.bf16.mxu0 %vm347_vm0, %v693_v6  ;;  %v694_v18 = vld [vmem:[%s868_s9 + $0x40] ss:$8 sps:$4 sm:$0xff]   ;;  %v699_v20 = vld [vmem:[%s868_s9 + $0x54] ss:$8 sps:$4 sm:$0xff]  }
  0x1a   : > { %607 = vmatprep.mubr.msk.bf16.mxu1 %vm347_vm0, %v696_v7  ;;  %v701_v21 = vld [vmem:[%s868_s9 + $0x10] ss:$8 sps:$4 sm:$0xff]   ;;  %v703_v23 = vld [vmem:[%s868_s9 + $0x24] ss:$8 sps:$4 sm:$0xff]   ;;  %v707_v25 = vld [vmem:[%s868_s9 + $0x20] ss:$8 sps:$4 sm:$0xff]   ;;  %p725_p3 = pnand %p724_p2, %p718_p13 }
  0x1b   : > { %386 = vmatpush1.bf16.msra.mxu0 %v684_v4  ;;  %631 = vmatpush1.bf16.msra.mxu1 %v684_v4  ;;  %v702_v22 = vld [vmem:[%s868_s9 + $0x50] ss:$8 sps:$4 sm:$0xff]   ;;  %v705_v24 = vld [vmem:[%s868_s9 + $0x64] ss:$8 sps:$4 sm:$0xff]   ;;  %v708_v26 = vld [vmem:[%s868_s9 + $0x60] ss:$8 sps:$4 sm:$0xff]  }
  0x1c   : > { %387 = vmatprep.subr.bf16.mxu0 %v779_v1  ;;  %622 = vmatprep.subr.bf16.mxu1 %v779_v1  ;;  %v709_v27 = vld [vmem:[%s868_s9 + $0x34] ss:$8 sps:$4 sm:$0xff]   ;;  %v713_v29 = vld [vmem:[%s868_s9 + $0x30] ss:$8 sps:$4 sm:$0xff]  }
  0x1d   : > { %v711_v28 = vld [vmem:[%s868_s9 + $0x74] ss:$8 sps:$4 sm:$0xff]   ;;  %v714_v30 = vld [vmem:[%s868_s9 + $0x70] ss:$8 sps:$4 sm:$0xff]   ;;  %s617_s9 = sshll.u32 %s825_s16, 11  ;;  %s965_s16 = scalar_lea.sflag [#allocation3], %s164_s4 }
  0x1e   : > { %s953_s19 = scalar_lea.hbm %s1009_s3, %s617_s9 }
  0x1f   : > { %388 = vmatpush1.bf16.msra.mxu0 %v685_v5  ;;  %632 = vmatpush1.bf16.msra.mxu1 %v685_v5 }
  0x20   : > { %389 = vmatprep.subr.bf16.mxu0 %v779_v1  ;;  %623 = vmatprep.subr.bf16.mxu1 %v779_v1 }
  0x23   : > { %390 = vmatpush1.bf16.msra.mxu0 %v686_v8  ;;  %633 = vmatpush1.bf16.msra.mxu1 %v686_v8 }
  0x24   : > { %391 = vmatprep.subr.bf16.mxu0 %v779_v1  ;;  %624 = vmatprep.subr.bf16.mxu1 %v779_v1 }
  0x27   : > { %392 = vmatpush1.bf16.msra.mxu0 %v687_v9  ;;  %634 = vmatpush1.bf16.msra.mxu1 %v687_v9 }
  0x28   : > { %393 = vmatprep.subr.bf16.mxu0 %v779_v1  ;;  %625 = vmatprep.subr.bf16.mxu1 %v779_v1 }
  0x2b   : > { %394 = vmatpush1.bf16.msra.mxu0 %v688_v10  ;;  %635 = vmatpush1.bf16.msra.mxu1 %v688_v10 }
  0x2c   : > { %395 = vmatprep.subr.bf16.mxu0 %v779_v1  ;;  %626 = vmatprep.subr.bf16.mxu1 %v779_v1 }
  0x2f   : > { %396 = vmatpush1.bf16.msra.mxu0 %v689_v13  ;;  %636 = vmatpush1.bf16.msra.mxu1 %v689_v13 }
  0x30   : > { %397 = vmatprep.subr.bf16.mxu0 %v779_v1  ;;  %627 = vmatprep.subr.bf16.mxu1 %v779_v1 }
  0x33   : > { %398 = vmatpush1.bf16.msra.mxu0 %v377_v16  ;;  %637 = vmatpush1.bf16.msra.mxu1 %v377_v16 }
  0x36   : > { %412 = vmatmul.mubr.bf16.vlgmr.msra.gmra.mrb[0].mxu0 %v691_v17  ;;  %444 = vmatmul.mubr.bf16.vlgmr.msra.gmra.mrb[0].mxu1 %v694_v18 }
  0x37   : > { %604 = vmatprep.mubr.msk.bf16.mxu0 %vm347_vm0, %v697_v19  ;;  %608 = vmatprep.mubr.msk.bf16.mxu1 %vm347_vm0, %v699_v20 }
  0x3e   : > { %420 = vmatmul.mubr.bf16.gmra.mrb[4].mxu0 %v701_v21  ;;  %452 = vmatmul.mubr.bf16.gmra.mrb[4].mxu1 %v702_v22 }
  0x3f   : > { %605 = vmatprep.mubr.msk.bf16.mxu0 %vm347_vm0, %v703_v23  ;;  %609 = vmatprep.mubr.msk.bf16.mxu1 %vm347_vm0, %v705_v24 }
  0x46   : > { %428 = vmatmul.mubr.bf16.gmra.mrb[8].mxu0 %v707_v25  ;;  %460 = vmatmul.mubr.bf16.gmra.mrb[8].mxu1 %v708_v26 }
  0x47   : > { %606 = vmatprep.mubr.msk.bf16.mxu0 %vm347_vm0, %v709_v27  ;;  %610 = vmatprep.mubr.msk.bf16.mxu1 %vm347_vm0, %v711_v28 }
  0x4e   : > { %436 = vmatmul.mubr.bf16.gmra.mrb[12].mxu0 %v713_v29  ;;  %468 = vmatmul.mubr.bf16.gmra.mrb[12].mxu1 %v714_v30 }
 0x109   : > { %v413_v32 = vpop.f32.mrb[0].mxu0  ;;  %v445_v33 = vpop.f32.mrb[0].mxu1 }
 0x10a   : > { %v414_v34 = vadd.f32 %v918_v31, %v413_v32  ;;  %v446_v35 = vadd.f32 %v918_v31, %v445_v33  ;;  %v415_v36 = vpop.f32.mrb[1].mxu0  ;;  %v447_v37 = vpop.f32.mrb[1].mxu1 }
 0x10b   : > { %v416_v38 = vpop.f32.mrb[2].mxu0  ;;  %v448_v39 = vpop.f32.mrb[2].mxu1 }
 0x10c   : > { %476 = vst [vmem:[%s922_s8] sm:$0xff] %v414_v34  ;;  %484 = vst [vmem:[%s922_s8 + $0x40] sm:$0xff] %v446_v35  ;;  %v417_v40 = vadd.f32 %v918_v31, %v416_v38  ;;  %v449_v41 = vadd.f32 %v918_v31, %v448_v39  ;;  %v418_v42 = vpop.f32.mrb[3].mxu0  ;;  %v450_v43 = vpop.f32.mrb[3].mxu1 }
 0x10e   : > { %477 = vst [vmem:[%s922_s8 + $0x8] sm:$0xff] %v417_v40  ;;  %485 = vst [vmem:[%s922_s8 + $0x48] sm:$0xff] %v449_v41 }
 0x111   : > { %v421_v44 = vpop.f32.mrb[4].mxu0  ;;  %v453_v45 = vpop.f32.mrb[4].mxu1 }
 0x112   : > { %v422_v46 = vadd.f32 %v918_v31, %v421_v44  ;;  %v454_v47 = vadd.f32 %v918_v31, %v453_v45  ;;  %v423_v48 = vpop.f32.mrb[5].mxu0  ;;  %v455_v49 = vpop.f32.mrb[5].mxu1 }
 0x113   : > { %v424_v50 = vpop.f32.mrb[6].mxu0  ;;  %v456_v51 = vpop.f32.mrb[6].mxu1 }
 0x114   : > { %478 = vst [vmem:[%s922_s8 + $0x10] sm:$0xff] %v422_v46  ;;  %486 = vst [vmem:[%s922_s8 + $0x50] sm:$0xff] %v454_v47  ;;  %v425_v52 = vadd.f32 %v918_v31, %v424_v50  ;;  %v457_v53 = vadd.f32 %v918_v31, %v456_v51  ;;  %v426_v54 = vpop.f32.mrb[7].mxu0  ;;  %v458_v55 = vpop.f32.mrb[7].mxu1 }
 0x116   : > { %479 = vst [vmem:[%s922_s8 + $0x18] sm:$0xff] %v425_v52  ;;  %487 = vst [vmem:[%s922_s8 + $0x58] sm:$0xff] %v457_v53 }
 0x119   : > { %v429_v56 = vpop.f32.mrb[8].mxu0  ;;  %v461_v57 = vpop.f32.mrb[8].mxu1 }
 0x11a   : > { %v430_v58 = vadd.f32 %v918_v31, %v429_v56  ;;  %v462_v59 = vadd.f32 %v918_v31, %v461_v57  ;;  %v431_v60 = vpop.f32.mrb[9].mxu0  ;;  %v463_v61 = vpop.f32.mrb[9].mxu1 }
 0x11b   : > { %v432_v62 = vpop.f32.mrb[10].mxu0  ;;  %v464_v63 = vpop.f32.mrb[10].mxu1 }
 0x11c   : > { %480 = vst [vmem:[%s922_s8 + $0x20] sm:$0xff] %v430_v58  ;;  %488 = vst [vmem:[%s922_s8 + $0x60] sm:$0xff] %v462_v59  ;;  %v433_v0 = vadd.f32 %v918_v31, %v432_v62  ;;  %v465_v1 = vadd.f32 %v918_v31, %v464_v63  ;;  %v434_v2 = vpop.f32.mrb[11].mxu0  ;;  %v466_v3 = vpop.f32.mrb[11].mxu1 }
 0x11e   : > { %481 = vst [vmem:[%s922_s8 + $0x28] sm:$0xff] %v433_v0  ;;  %489 = vst [vmem:[%s922_s8 + $0x68] sm:$0xff] %v465_v1 }
 0x121   : > { %v437_v4 = vpop.f32.mrb[12].mxu0  ;;  %v469_v5 = vpop.f32.mrb[12].mxu1 }
 0x122   : > { %v438_v6 = vadd.f32 %v918_v31, %v437_v4  ;;  %v470_v7 = vadd.f32 %v918_v31, %v469_v5  ;;  %v439_v8 = vpop.f32.mrb[13].mxu0  ;;  %v471_v9 = vpop.f32.mrb[13].mxu1 }
 0x123   : > { %v440_v10 = vpop.f32.mrb[14].mxu0  ;;  %v472_v11 = vpop.f32.mrb[14].mxu1 }
 0x124   : > { %482 = vst [vmem:[%s922_s8 + $0x30] sm:$0xff] %v438_v6  ;;  %490 = vst [vmem:[%s922_s8 + $0x70] sm:$0xff] %v470_v7  ;;  %v441_v12 = vadd.f32 %v918_v31, %v440_v10  ;;  %v473_v13 = vadd.f32 %v918_v31, %v472_v11  ;;  %v442_v14 = vpop.f32.mrb[15].mxu0  ;;  %v474_v15 = vpop.f32.mrb[15].mxu1 }
 0x126   : > { %483 = vst [vmem:[%s922_s8 + $0x38] sm:$0xff] %v441_v12  ;;  %491 = vst [vmem:[%s922_s8 + $0x78] sm:$0xff] %v473_v13 }
 0x127   : > { %728 = shalt.err (!%p725_p3)
}
 0x128   : > { %s729_s27 = scalar_lea.hbm %s953_s19, 2048  ;;  %s733_s30 = scalar_lea.hbm %s1009_s3, 4096 }
 0x129   : > { %p730_p4 = scmp.ne.s32.totalorder %s953_s19, %s729_s27  ;;  %p734_p9 = scmp.lt.u32.totalorder %s953_s19, %s1009_s3 }
 0x12a   : > { %p735_p10 = scmp.lt.u32.totalorder %s733_s30, %s729_s27  ;;  %p737_p12 = scmp.lt.u32.totalorder %s729_s27, %s953_s19 }
 0x12b   : > { %p731_p7 = pnand %p730_p4, %p842_p5 }
 0x12c   : > { %p736_p11 = por %p735_p10, %p734_p9 }
 0x12d   : > { %p732_p8 = pneg %p731_p7 }
 0x12e   : > { %p738_p13 = por %p737_p12, %p736_p11 }
 0x130   : > { %p739_p0 = pnand %p738_p13, %p732_p8 }
 0x132   : > { %742 = shalt.err (!%p739_p0)
}
 0x133   : > { %s782_s6 = smov 128   ;;  %s783_s7 = smov 8  }
 0x134   : > { %638 = dma.vmem_to_hbm [thread:$0]  (%p842_p5), %s955_s10, 2048, %s953_s19, %s965_s16, %s782_s6, %s782_s6, %s783_s7  }
 0x135 PF: > { %p644_p1 = scmp.ge.s32.totalorder %s777_s15, 2  ;;  %s521_s8 = sand.u32 1, %s765_s12  }
 0x136   : > { %s522_s9 = scalar_lea.sflag [#allocation3], %s521_s8 }
 0x137   : > { %p641_p2 = pnand %p644_p1, %p846_p6 }
 0x139   : > { %760 = dma.done.wait (!%p641_p2), %s522_s9, 2048  }
 0x13a   : > { %762 = vsyncadd (!%p641_p2), %s522_s9, 4294965248  ;;  %p13_p3 = scmp.ge.s32.totalorder %s829_s18, 4   ;;  %s1012_s12 = smov %s769_s13 }
 0x13b   : > { %s1013_s13 = smov %s773_s14  ;;  %s1014_s14 = smov %s840_s21 }
 0x13c   : > { %s1015_s15 = smov %s829_s18  ;;  %15 = sbr.rel (!%p13_p3) target bundleno = 3 (0x3), region = 67 }
 0x143   :  { %527 = vsyncpa [#allocation3], 1 }
 0x144   :  { %529 = vsyncpa [#allocation3 + $0x1], 1 }

</bundles_post_ra>
